<compile_context>
chip_gen: v6e
topology: v6e:2x2x1
jax: 0.10.0
libtpu: 0.0.40
codegen_flags: <defaults>
</compile_context>

<pallas_src>
import math

import jax
import jax.numpy as jnp
from jax.experimental import pallas as pl
from jax.experimental.pallas import tpu as pltpu


def _hmm_linear_kernel(x_ref, w_ref, b_ref, o_ref):
    # x_ref: (TM, K)   w_ref: (K, D)   b_ref: (1, D)   o_ref: (TM, D)
    y = jnp.dot(x_ref[...], w_ref[...], preferred_element_type=jnp.float32)
    y = y + b_ref[...].astype(jnp.float32)          # broadcast (1, D) over rows
    o_ref[...] = y.astype(o_ref.dtype)


def hmm_embedder_forward(hmm, weight, bias, *, tm=2048):
    """hmm: (..., 15); weight: (msa_dim, 15); bias: (msa_dim,). Returns (..., msa_dim)."""
    in_dim = hmm.shape[-1]
    msa_dim = weight.shape[0]
    assert weight.shape == (msa_dim, in_dim)
    assert bias.shape == (msa_dim,)

    lead_shape = hmm.shape[:-1]
    n = math.prod(lead_shape) if lead_shape else 1

    # Lane-packing factor: fold `pack` consecutive rows into one 128-lane-dense
    # output row when possible (free reshape: same contiguous memory).
    if msa_dim < 128 and 128 % msa_dim == 0 and n % (128 // msa_dim) == 0:
        pack = 128 // msa_dim
    else:
        pack = 1

    k = pack * in_dim
    d_out = pack * msa_dim
    n_rows = n // pack

    x = hmm.reshape(n_rows, k)

    if pack == 1:
        w_blk = weight.T                              # (in_dim, msa_dim)
        b_blk = bias.reshape(1, msa_dim)
    else:
        # Block-diagonal weight: block p maps input slice [p*15:(p+1)*15]
        # to output slice [p*msa_dim:(p+1)*msa_dim].
        eye = jnp.eye(pack, dtype=weight.dtype)
        w_blk = jnp.kron(eye, weight.T)               # (pack*in_dim, pack*msa_dim)
        b_blk = jnp.tile(bias, (pack,)).reshape(1, d_out)

    # Row tile: big (amortize per-step overhead), multiple of 8, clamped so the
    # block never exceeds the array (when n_rows <= tm, full-dim block is used).
    if n_rows <= tm:
        tm_eff = n_rows
    else:
        tm_eff = (tm // 8) * 8
    grid = (pl.cdiv(n_rows, tm_eff),)

    itemsize = jnp.dtype(hmm.dtype).itemsize
    cost = pl.CostEstimate(
        flops=2 * n * in_dim * msa_dim,
        transcendentals=0,
        bytes_accessed=int(n_rows * k * itemsize
                           + n_rows * d_out * itemsize
                           + k * d_out * itemsize
                           + d_out * itemsize),
    )

    out = pl.pallas_call(
        _hmm_linear_kernel,
        out_shape=jax.ShapeDtypeStruct((n_rows, d_out), hmm.dtype),
        grid_spec=pltpu.PrefetchScalarGridSpec(
            num_scalar_prefetch=0,
            grid=grid,
            in_specs=[
                # K and D are full-extent blocks; row tile is a multiple of 8
                # (or the full row extent).  Trailing partial row-block (if any)
                # is masked by Pallas -> no input padding needed.
                pl.BlockSpec((tm_eff, k), lambda i: (i, 0)),
                pl.BlockSpec((k, d_out), lambda i: (0, 0)),
                pl.BlockSpec((1, d_out), lambda i: (0, 0)),
            ],
            out_specs=pl.BlockSpec((tm_eff, d_out), lambda i: (i, 0)),
        ),
        compiler_params=pltpu.CompilerParams(
            dimension_semantics=("parallel",),
        ),
        cost_estimate=cost,
    )(x, w_blk, b_blk)

    # (n_rows, pack*msa_dim) and (n, msa_dim) are the same contiguous buffer.
    return out.reshape(*lead_shape, msa_dim)


def _torch_like_linear_init(key, out_features, in_features, dtype=jnp.float32):
    """Deterministic init mimicking nn.Linear's default uniform(-1/sqrt(fan_in), ...)."""
    kw, kb = jax.random.split(key)
    bound = 1.0 / jnp.sqrt(jnp.array(in_features, dtype=jnp.float32))
    weight = jax.random.uniform(kw, (out_features, in_features), dtype=dtype,
                                minval=-bound, maxval=bound)
    bias = jax.random.uniform(kb, (out_features,), dtype=dtype,
                              minval=-bound, maxval=bound)
    return weight, bias


if __name__ == "__main__":
    key = jax.random.PRNGKey(0)
    k_in, k_param = jax.random.split(key)

    # config = {'msa_dim': 32}; hmm: (batch=2, seq=8, 15)
    msa_dim = 32
    in_dim = 15
    hmm = jax.random.normal(k_in, (2, 8, in_dim), dtype=jnp.float32)
    weight, bias = _torch_like_linear_init(k_param, msa_dim, in_dim)

    out = hmm_embedder_forward(hmm, weight, bias)
    out = jax.block_until_ready(out)

    # Reference check in plain JAX (same semantics as nn.Linear).
    ref = hmm @ weight.T + bias
    assert out.shape == (2, 8, msa_dim)
    assert jnp.allclose(out, ref, atol=1e-5, rtol=1e-5)

    print("KERNEL_OK")
</pallas_src>

<mosaic_0001>
module attributes {stable_mosaic.version = 11 : i64} {
  func.func @_hmm_linear_kernel(%arg0: i32, %arg1: memref<4x60xf32, #tpu.memory_space<vmem>>, %arg2: memref<60x128xf32, #tpu.memory_space<vmem>>, %arg3: memref<1x128xf32, #tpu.memory_space<vmem>>, %arg4: memref<4x128xf32, #tpu.memory_space<vmem>>) attributes {dimension_semantics = [#tpu.dimension_semantics<parallel>], iteration_bounds = array<i64: 1>, scalar_prefetch = 0 : i64, scratch_operands = 0 : i64, tpu.core_type = #tpu.core_type<tc>, window_params = [{transform_indices = @transform_0, window_bounds = array<i64: 4, 60>}, {pipeline_mode = #tpu.pipeline_mode<synchronous>, transform_indices = @transform_1, window_bounds = array<i64: 60, 128>}, {pipeline_mode = #tpu.pipeline_mode<synchronous>, transform_indices = @transform_2, window_bounds = array<i64: 1, 128>}, {transform_indices = @transform_3, window_bounds = array<i64: 4, 128>}]} {
    %c0 = arith.constant 0 : index
    %c0_0 = arith.constant 0 : index
    %0 = vector.load %arg1[%c0, %c0_0] : memref<4x60xf32, #tpu.memory_space<vmem>>, vector<4x60xf32>
    %c0_1 = arith.constant 0 : index
    %c0_2 = arith.constant 0 : index
    %1 = vector.load %arg2[%c0_1, %c0_2] : memref<60x128xf32, #tpu.memory_space<vmem>>, vector<60x128xf32>
    %cst = arith.constant dense<0.000000e+00> : vector<4x128xf32>
    %2 = tpu.matmul %0, %1, %cst {dimension_numbers = #tpu.dot_dimension_numbers<[1], [0], [0], [1], [0, 0, 1, 1], [], []>} : vector<4x60xf32>, vector<60x128xf32>, vector<4x128xf32> -> vector<4x128xf32>
    %c0_3 = arith.constant 0 : index
    %c0_4 = arith.constant 0 : index
    %3 = vector.load %arg3[%c0_3, %c0_4] : memref<1x128xf32, #tpu.memory_space<vmem>>, vector<1x128xf32>
    %4 = vector.broadcast %3 : vector<1x128xf32> to vector<4x128xf32>
    %5 = arith.addf %2, %4 : vector<4x128xf32>
    %c0_5 = arith.constant 0 : index
    %c0_6 = arith.constant 0 : index
    %6 = vector.load %arg4[%c0_5, %c0_6] : memref<4x128xf32, #tpu.memory_space<vmem>>, vector<4x128xf32>
    tpu.vector_store %arg4[%c0_5, %c0_6], %5 {strides = array<i32>} : memref<4x128xf32, #tpu.memory_space<vmem>>, vector<4x128xf32>,
    return
  }
  func.func @transform_0(%arg0: i32) -> (i32, i32) {
    %c0_i32 = arith.constant 0 : i32
    %c0_i32_0 = arith.constant 0 : i32
    return %arg0, %c0_i32 : i32, i32
  }
  func.func @transform_1(%arg0: i32) -> (i32, i32) {
    %c0_i32 = arith.constant 0 : i32
    %c0_i32_0 = arith.constant 0 : i32
    %c0_i32_1 = arith.constant 0 : i32
    return %c0_i32, %c0_i32_0 : i32, i32
  }
  func.func @transform_2(%arg0: i32) -> (i32, i32) {
    %c0_i32 = arith.constant 0 : i32
    %c0_i32_0 = arith.constant 0 : i32
    %c0_i32_1 = arith.constant 0 : i32
    return %c0_i32, %c0_i32_0 : i32, i32
  }
  func.func @transform_3(%arg0: i32) -> (i32, i32) {
    %c0_i32 = arith.constant 0 : i32
    %c0_i32_0 = arith.constant 0 : i32
    return %arg0, %c0_i32 : i32, i32
  }
}

</mosaic_0001>

<bundles_post_ra>
// kernel: tpu_custom_call.1
= control target key start
LH: loop header
LB: loop body
LE: loop exit
PB: predicated region body
PF: predicated region fallthrough
CT: control target
= control target key end

     0   :  { %8 = vsyncpa [#allocation3], 0  ;;  %s295_s0 = inlined_call_operand.hbm [shape: f32[4,60], index: 0, kind: input, shape index: {}]   ;;  %s296_s1 = inlined_call_operand.hbm [shape: f32[60,128], index: 1, kind: input, shape index: {}]   ;;  %s297_s2 = inlined_call_operand.vmem [shape: f32[1,128], index: 2, kind: input, shape index: {}]   ;;  %s298_s3 = inlined_call_operand.hbm [shape: f32[4,128], index: 3, kind: output, shape index: {}]  }
   0x1   :  { %9 = vsyncpa [#allocation6], 0 }
   0x2   :  { %10 = vsyncpa [#allocation4], 0  ;;  %s256_s12 = smov [#allocation2]   ;;  %s257_s14 = smov [#allocation5]  }
   0x3   :  { %s17_s13 = sshll.u32 %s256_s12, 4  ;;  %s26_s15 = sshll.u32 %s257_s14, 4  ;;  %s18_s13 = int_to_ptr.vmem [resolvable:$true] %s17_s13  ;;  %s27_s15 = int_to_ptr.vmem [resolvable:$true] %s26_s15 }
   0x4   :  { %s198_s16 = scalar_lea.vmem %s18_s13, 64  ;;  %p203_p1 = scmp.lt.s32.totalorder %s18_s13, %s18_s13 }
   0x5   :  { %p199_p0 = scmp.ne.s32.totalorder %s18_s13, %s198_s16  ;;  %p204_p2 = scmp.lt.s32.totalorder %s198_s16, %s198_s16 }
   0x7   :  { %p205_p3 = por %p204_p2, %p203_p1 }
   0x9   :  { %p206_p4 = pnand %p205_p3, %p199_p0 }
   0xb   :  { %209 = shalt.err (!%p206_p4)
}
   0xc   :  { %20 = dma.hbm_to_vmem [thread:$0]  %s295_s0, 64, %s18_s13, [#allocation3]  }
   0xd   :  { %s218_s19 = scalar_lea.vmem %s27_s15, 1024  ;;  %p223_p6 = scmp.lt.s32.totalorder %s27_s15, %s27_s15 }
   0xe   :  { %p219_p5 = scmp.ne.s32.totalorder %s27_s15, %s218_s19  ;;  %p224_p7 = scmp.lt.s32.totalorder %s218_s19, %s218_s19 }
  0x10   :  { %p225_p8 = por %p224_p7, %p223_p6 }
  0x12   :  { %p226_p9 = pnand %p225_p8, %p219_p5 }
  0x14   :  { %229 = shalt.err (!%p226_p9)
}
  0x15   :  { %s258_s20 = smov 128   ;;  %s259_s21 = smov 8  }
  0x16   :  { %32 = dma.hbm_to_vmem [thread:$0]  %s296_s1, 1024, %s27_s15, [#allocation6], %s258_s20, %s258_s20, %s259_s21  }
  0x17   :  { %250 = dma.done.wait [#allocation3], 64  }
  0x18   :  { %251 = vsyncadd [#allocation3], 4294967232 }
  0x19   :  { %252 = dma.done.wait [#allocation6], 1024  }
  0x1a   :  { %253 = vsyncadd [#allocation6], 4294966272  ;;  %v260_v0 = vmov 0.0   ;;  %vm261_vm0 = vmmov 0   ;;  %vm61_vm1 = vcmask 1043456   ;;  %v48_v2 = vld [vmem:[#allocation5 + $0x30] sm:$0xff] }
  0x1b   :  { %164 = vmatprep.subr.mxu0 %v260_v0  ;;  %180 = vmatprep.mubr.msk.f32.mxu0 %vm261_vm0, %v260_v0  ;;  %v49_v1 = vld [vmem:[#allocation5 + $0x38] sm:$0xf]  ;;  %v47_v3 = vld [vmem:[#allocation5 + $0x28] sm:$0xff]  ;;  %v46_v4 = vld [vmem:[#allocation5 + $0x20] sm:$0xff]  ;;  %vm57_vm2 = vcmask 490496   ;;  %s262_s24 = smov [#allocation7]  }
  0x1c   :  { %165 = vmatpush3.msk.msra.mxu0 %vm61_vm1, %v49_v1  ;;  %v45_v5 = vld [vmem:[#allocation5 + $0x18] sm:$0xff]  ;;  %v44_v6 = vld [vmem:[#allocation5 + $0x10] sm:$0xff]  ;;  %v43_v7 = vld [vmem:[#allocation5 + $0x8] sm:$0xff]  ;;  %s142_s25 = sshll.u32 %s262_s24, 4  ;;  %s143_s25 = int_to_ptr.vmem [resolvable:$true] %s142_s25 }
  0x1d   :  { %166 = vmatprep.subr.mxu0 %v260_v0  ;;  %v42_v8 = vld [vmem:[#allocation5] sm:$0xff]  ;;  %v41_v9 = vld [vmem:[#allocation2] sm:$0xf]  ;;  %s230_s26 = scalar_lea.vmem %s143_s25, 64  ;;  %p235_p11 = scmp.lt.s32.totalorder %s143_s25, %s143_s25 }
  0x1e   :  { %167 = vmatpush3.msra.mxu0 %v48_v2  ;;  %v152_v10 = vld [vmem:[%s297_s2] ss:$0 sm:$0xff]  ;;  %p231_p10 = scmp.ne.s32.totalorder %s143_s25, %s230_s26  ;;  %p236_p12 = scmp.lt.s32.totalorder %s230_s26, %s230_s26 }
  0x1f   :  { %168 = vmatprep.subr.mxu0 %v260_v0 }
  0x20   :  { %169 = vmatpush3.msra.mxu0 %v47_v3  ;;  %p237_p13 = por %p236_p12, %p235_p11 }
  0x21   :  { %170 = vmatprep.subr.mxu0 %v260_v0 }
  0x22   :  { %171 = vmatpush3.msra.mxu0 %v46_v4  ;;  %p238_p0 = pnand %p237_p13, %p231_p10 }
  0x23   :  { %172 = vmatprep.subr.mxu0 %v260_v0 }
  0x24   :  { %173 = vmatpush3.msra.mxu0 %v45_v5 }
  0x25   :  { %174 = vmatprep.subr.mxu0 %v260_v0 }
  0x26   :  { %175 = vmatpush3.msra.mxu0 %v44_v6 }
  0x27   :  { %176 = vmatprep.subr.mxu0 %v260_v0 }
  0x28   :  { %177 = vmatpush3.msra.mxu0 %v43_v7 }
  0x29   :  { %178 = vmatprep.subr.mxu0 %v260_v0 }
  0x2a   :  { %179 = vmatpush3.msra.mxu0 %v42_v8 }
  0x2b   :  { %181 = vmatmul.mubr.msk.f32.vlgmr.msra.gmra.mxu0 %vm57_vm2, %v41_v9 }
  0xeb   :  { %v131_v11 = vpop.f32.mrf.mxu0 }
  0xec   :  { %v132_v12 = vadd.f32 %v152_v10, %v131_v11 }
  0xed   :  { %v182_v13 = vpop.f32.mrf.mxu0 }
  0xee   :  { %135 = vst [vmem:[#allocation7] sm:$0xf] %v132_v12 }
  0xef   :  { %241 = shalt.err (!%p238_p0)
}
  0xf0   :  { %145 = dma.vmem_to_hbm [thread:$0]  %s143_s25, 64, %s298_s3, [#allocation4]  }
  0xf1   :  { %254 = dma.done.wait [#allocation4], 64  }
  0xf2   :  { %255 = vsyncadd [#allocation4], 4294967232 }
  0xf3   :  { %149 = vsyncpa [#allocation3], 1 }
  0xf4   :  { %150 = vsyncpa [#allocation6], 1 }
  0xf5   :  { %151 = vsyncpa [#allocation4], 1 }

</bundles_post_ra>
